<compile_context>
chip_gen: v7x
topology: tpu7x:2x2x1
jax: 0.10.0
libtpu: 0.0.40
codegen_flags: <defaults>
</compile_context>

<pallas_src>
import functools
import math

import jax
import jax.numpy as jnp
from jax import lax
from jax.experimental import pallas as pl
from jax.experimental.pallas import tpu as pltpu


def _contract(a, b):
    """a: [rows, d_in], b: [d_out, d_in] (PyTorch nn.Linear layout) -> a @ b.T."""
    return lax.dot_general(a, b, (((1,), (1,)), ((), ())),
                           preferred_element_type=jnp.float32)


def _ae_kernel(x_ref,
               w1_ref, b1_ref,
               w2_ref, b2_ref,
               w3_ref, b3_ref,
               w4_ref, b4_ref,
               lat_ref, rec_ref):
    """Fused 4-layer MLP autoencoder for one batch-row tile.

    x_ref:   [tile, d0]   (natural layout, batch on the sublane axis, f32)
    wK_ref:  [dK, dK-1]   (PyTorch nn.Linear layout, compute dtype)
    bK_ref:  [1, dK]      (float32)
    lat_ref: [tile, d2]   (out dtype)
    rec_ref: [tile, d4]   (out dtype)
    """
    cd = w1_ref.dtype                       # MXU compute dtype (bf16 or f32)
    x = x_ref[...].astype(cd)               # cast in-kernel: no extra HBM copy

    # ---- encoder ----
    h1 = jnp.maximum(_contract(x, w1_ref[...]) + b1_ref[...], 0.0)      # ReLU
    h2 = _contract(h1.astype(cd), w2_ref[...]) + b2_ref[...]            # latent
    lat_ref[...] = h2.astype(lat_ref.dtype)

    # ---- decoder ----
    h3 = jnp.maximum(_contract(h2.astype(cd), w3_ref[...]) + b3_ref[...], 0.0)
    h4 = _contract(h3.astype(cd), w4_ref[...]) + b4_ref[...]
    rec_ref[...] = jnp.tanh(h4).astype(rec_ref.dtype)                   # EUP tanh


def _round_up(x, m):
    return (x + m - 1) // m * m


@functools.partial(jax.jit,
                   static_argnames=("tile_n", "compute_dtype", "out_dtype"))
def my_ae_forward(h0, params, tile_n=8192,
                  compute_dtype=jnp.bfloat16, out_dtype=jnp.bfloat16):
    """MyAE forward. h0: [N, d0]; params in PyTorch layout (w:[d_out,d_in], b:[d_out]).

    Returns (latent [N, d2], reconstruction [N, d4]) in `out_dtype`.
    """
    w1, b1, w2, b2, w3, b3, w4, b4 = params
    N, d0 = h0.shape
    d1, d2, d3, d4 = w1.shape[0], w2.shape[0], w3.shape[0], w4.shape[0]

    # --- even-split batch tiling; batch stays on the sublane axis -----------
    n_steps = max(1, pl.cdiv(N, tile_n))
    # v7x has 2 TensorCores: keep >= 2 "parallel" grid steps once the batch is
    # big enough that each step still moves a healthy amount of data.
    if n_steps < 2 and N >= 4096:
        n_steps = 2
    if n_steps == 1:
        tile = N                      # block == full dim: no alignment / padding
    else:
        tile = _round_up(pl.cdiv(N, n_steps), 8)   # sublane alignment only
        n_steps = pl.cdiv(N, tile)
    n_pad = tile * n_steps

    # Pad only when needed (< 8 garbage rows per step); no transpose, no cast.
    x = h0 if n_pad == N else jnp.pad(h0, ((0, n_pad - N), (0, 0)))

    # Weights in MXU compute dtype (tiny copies); biases f32 as [1, d_out].
    w1c, w2c, w3c, w4c = (w.astype(compute_dtype) for w in (w1, w2, w3, w4))
    b1c, b2c, b3c, b4c = (b.astype(jnp.float32).reshape(1, -1)
                          for b in (b1, b2, b3, b4))

    def batch_spec(d):
        return pl.BlockSpec((tile, d), lambda i: (i, 0))

    def whole_spec(shape):
        return pl.BlockSpec(shape, lambda i: tuple(0 for _ in shape))

    c_bytes = jnp.dtype(compute_dtype).itemsize
    o_bytes = jnp.dtype(out_dtype).itemsize
    x_bytes = jnp.dtype(x.dtype).itemsize
    param_bytes = (sum(int(w.size) for w in (w1c, w2c, w3c, w4c)) * c_bytes
                   + sum(int(b.size) for b in (b1c, b2c, b3c, b4c)) * 4)

    # Double-buffered input/output blocks + resident params + f32 intermediates
    # (generous 2x fudge on intermediates).  Cap at 64 MiB (v7x physical).
    vmem_est = (2 * tile * d0 * x_bytes
                + 2 * tile * (d2 + d4) * o_bytes
                + 2 * param_bytes
                + 2 * tile * (d1 + d2 + d3 + d4) * 4)
    vmem_limit = int(min(64 * 1024 * 1024,
                         max(32 * 1024 * 1024, 2 * vmem_est)))

    cost = pl.CostEstimate(
        flops=2 * n_pad * (d0 * d1 + d1 * d2 + d2 * d3 + d3 * d4),
        transcendentals=n_pad * d4,
        bytes_accessed=int(n_pad * d0 * x_bytes + param_bytes
                           + n_pad * (d2 + d4) * o_bytes),
    )

    lat, rec = pl.pallas_call(
        _ae_kernel,
        out_shape=(
            jax.ShapeDtypeStruct((n_pad, d2), out_dtype),   # latent
            jax.ShapeDtypeStruct((n_pad, d4), out_dtype),   # reconstruction
        ),
        grid_spec=pltpu.PrefetchScalarGridSpec(
            num_scalar_prefetch=0,
            grid=(n_steps,),
            in_specs=[
                batch_spec(d0),
                whole_spec(w1c.shape), whole_spec(b1c.shape),
                whole_spec(w2c.shape), whole_spec(b2c.shape),
                whole_spec(w3c.shape), whole_spec(b3c.shape),
                whole_spec(w4c.shape), whole_spec(b4c.shape),
            ],
            out_specs=[batch_spec(d2), batch_spec(d4)],
        ),
        compiler_params=pltpu.CompilerParams(
            dimension_semantics=("parallel",),
            vmem_limit_bytes=vmem_limit),
        cost_estimate=cost,
    )(x, w1c, b1c, w2c, b2c, w3c, b3c, w4c, b4c)

    if n_pad != N:
        lat, rec = lat[:N], rec[:N]
    return lat, rec


def init_linear_params(key, d_in, d_out):
    """torch.nn.Linear default init (uniform ±1/sqrt(d_in)), PyTorch layout."""
    kw, kb = jax.random.split(key)
    bound = 1.0 / math.sqrt(d_in)
    w = jax.random.uniform(kw, (d_out, d_in), jnp.float32, -bound, bound)
    b = jax.random.uniform(kb, (d_out,), jnp.float32, -bound, bound)
    return w, b


def init_my_ae_params(key, d0, d1, d2, d3, d4):
    k1, k2, k3, k4 = jax.random.split(key, 4)
    w1, b1 = init_linear_params(k1, d0, d1)
    w2, b2 = init_linear_params(k2, d1, d2)
    w3, b3 = init_linear_params(k3, d2, d3)
    w4, b4 = init_linear_params(k4, d3, d4)
    return (w1, b1, w2, b2, w3, b3, w4, b4)


def my_ae_reference(h0, params, compute_dtype=jnp.float32):
    """Pure-JAX reference of the PyTorch forward, mirroring the kernel's casts."""
    w1, b1, w2, b2, w3, b3, w4, b4 = params
    cd = compute_dtype

    def lin(x, w, b):
        return jnp.dot(x.astype(cd), w.astype(cd).T,
                       preferred_element_type=jnp.float32) + b.astype(jnp.float32)

    h1 = jnp.maximum(lin(h0, w1, b1), 0.0)
    h2 = lin(h1, w2, b2)
    h3 = jnp.maximum(lin(h2, w3, b3), 0.0)
    h4 = jnp.tanh(lin(h3, w4, b4))
    return h2, h4


if __name__ == "__main__":
    # Layer widths d_0 .. d_4 consistent with the module; small odd batch to
    # exercise both the single-step (tile == N) and multi-step/padding paths.
    d0, d1, d2, d3, d4 = 32, 64, 16, 64, 32
    N = 300

    key = jax.random.PRNGKey(0)
    k_params, k_x = jax.random.split(key)
    params = init_my_ae_params(k_params, d0, d1, d2, d3, d4)
    h0 = jax.random.normal(k_x, (N, d0), jnp.float32)

    # --- float32 compute + f32 outputs, small tile -> 3 grid steps + padding ---
    lat32, rec32 = my_ae_forward(h0, params, tile_n=128,
                                 compute_dtype=jnp.float32,
                                 out_dtype=jnp.float32)
    jax.block_until_ready((lat32, rec32))
    lat_ref32, rec_ref32 = my_ae_reference(h0, params, jnp.float32)
    assert lat32.shape == (N, d2) and rec32.shape == (N, d4)
    assert jnp.allclose(lat32, lat_ref32, atol=1e-4, rtol=1e-4)
    assert jnp.allclose(rec32, rec_ref32, atol=1e-4, rtol=1e-4)

    # --- default path: bf16 compute, bf16 outputs, single tile == N -----------
    lat16, rec16 = my_ae_forward(h0, params)
    jax.block_until_ready((lat16, rec16))
    lat_ref16, rec_ref16 = my_ae_reference(h0, params, jnp.bfloat16)
    assert lat16.shape == (N, d2) and rec16.shape == (N, d4)
    assert jnp.allclose(lat16.astype(jnp.float32), lat_ref16,
                        atol=6e-2, rtol=6e-2)
    assert jnp.allclose(rec16.astype(jnp.float32), rec_ref16,
                        atol=6e-2, rtol=6e-2)

    print("KERNEL_OK")
</pallas_src>

<mosaic_0001>
module attributes {stable_mosaic.version = 11 : i64} {
  func.func @_ae_kernel(%arg0: i32, %arg1: memref<104x32xf32, #tpu.memory_space<vmem>>, %arg2: memref<64x32xf32, #tpu.memory_space<vmem>>, %arg3: memref<1x64xf32, #tpu.memory_space<vmem>>, %arg4: memref<16x64xf32, #tpu.memory_space<vmem>>, %arg5: memref<1x16xf32, #tpu.memory_space<vmem>>, %arg6: memref<64x16xf32, #tpu.memory_space<vmem>>, %arg7: memref<1x64xf32, #tpu.memory_space<vmem>>, %arg8: memref<32x64xf32, #tpu.memory_space<vmem>>, %arg9: memref<1x32xf32, #tpu.memory_space<vmem>>, %arg10: memref<104x16xf32, #tpu.memory_space<vmem>>, %arg11: memref<104x32xf32, #tpu.memory_space<vmem>>) attributes {dimension_semantics = [#tpu.dimension_semantics<parallel>], iteration_bounds = array<i64: 3>, scalar_prefetch = 0 : i64, scratch_operands = 0 : i64, tpu.core_type = #tpu.core_type<tc>, window_params = [{transform_indices = @transform_0, window_bounds = array<i64: 104, 32>}, {pipeline_mode = #tpu.pipeline_mode<synchronous>, transform_indices = @transform_1, window_bounds = array<i64: 64, 32>}, {pipeline_mode = #tpu.pipeline_mode<synchronous>, transform_indices = @transform_2, window_bounds = array<i64: 1, 64>}, {pipeline_mode = #tpu.pipeline_mode<synchronous>, transform_indices = @transform_3, window_bounds = array<i64: 16, 64>}, {pipeline_mode = #tpu.pipeline_mode<synchronous>, transform_indices = @transform_4, window_bounds = array<i64: 1, 16>}, {pipeline_mode = #tpu.pipeline_mode<synchronous>, transform_indices = @transform_5, window_bounds = array<i64: 64, 16>}, {pipeline_mode = #tpu.pipeline_mode<synchronous>, transform_indices = @transform_6, window_bounds = array<i64: 1, 64>}, {pipeline_mode = #tpu.pipeline_mode<synchronous>, transform_indices = @transform_7, window_bounds = array<i64: 32, 64>}, {pipeline_mode = #tpu.pipeline_mode<synchronous>, transform_indices = @transform_8, window_bounds = array<i64: 1, 32>}, {transform_indices = @transform_9, window_bounds = array<i64: 104, 16>}, {transform_indices = @transform_10, window_bounds = array<i64: 104, 32>}]} {
    %c0 = arith.constant 0 : index
    %c0_0 = arith.constant 0 : index
    %0 = vector.load %arg1[%c0, %c0_0] : memref<104x32xf32, #tpu.memory_space<vmem>>, vector<104x32xf32>
    %c0_1 = arith.constant 0 : index
    %c0_2 = arith.constant 0 : index
    %1 = vector.load %arg2[%c0_1, %c0_2] : memref<64x32xf32, #tpu.memory_space<vmem>>, vector<64x32xf32>
    %cst = arith.constant dense<0.000000e+00> : vector<104x64xf32>
    %2 = tpu.matmul %0, %1, %cst {dimension_numbers = #tpu.dot_dimension_numbers<[1], [1], [0], [0], [0, 0, 1, 0], [], []>} : vector<104x32xf32>, vector<64x32xf32>, vector<104x64xf32> -> vector<104x64xf32>
    %c0_3 = arith.constant 0 : index
    %c0_4 = arith.constant 0 : index
    %3 = vector.load %arg3[%c0_3, %c0_4] : memref<1x64xf32, #tpu.memory_space<vmem>>, vector<1x64xf32>
    %4 = vector.broadcast %3 : vector<1x64xf32> to vector<104x64xf32>
    %5 = arith.addf %2, %4 : vector<104x64xf32>
    %cst_5 = arith.constant 0.000000e+00 : f32
    %6 = vector.broadcast %cst_5 : f32 to vector<104x64xf32>
    %7 = arith.maximumf %5, %6 : vector<104x64xf32>
    %c0_6 = arith.constant 0 : index
    %c0_7 = arith.constant 0 : index
    %8 = vector.load %arg4[%c0_6, %c0_7] : memref<16x64xf32, #tpu.memory_space<vmem>>, vector<16x64xf32>
    %cst_8 = arith.constant dense<0.000000e+00> : vector<104x16xf32>
    %9 = tpu.matmul %7, %8, %cst_8 {dimension_numbers = #tpu.dot_dimension_numbers<[1], [1], [0], [0], [0, 0, 1, 0], [], []>} : vector<104x64xf32>, vector<16x64xf32>, vector<104x16xf32> -> vector<104x16xf32>
    %c0_9 = arith.constant 0 : index
    %c0_10 = arith.constant 0 : index
    %10 = vector.load %arg5[%c0_9, %c0_10] : memref<1x16xf32, #tpu.memory_space<vmem>>, vector<1x16xf32>
    %11 = vector.broadcast %10 : vector<1x16xf32> to vector<104x16xf32>
    %12 = arith.addf %9, %11 : vector<104x16xf32>
    %c0_11 = arith.constant 0 : index
    %c0_12 = arith.constant 0 : index
    %13 = vector.load %arg10[%c0_11, %c0_12] : memref<104x16xf32, #tpu.memory_space<vmem>>, vector<104x16xf32>
    tpu.vector_store %arg10[%c0_11, %c0_12], %12 {strides = array<i32>} : memref<104x16xf32, #tpu.memory_space<vmem>>, vector<104x16xf32>,
    %c0_13 = arith.constant 0 : index
    %c0_14 = arith.constant 0 : index
    %14 = vector.load %arg6[%c0_13, %c0_14] : memref<64x16xf32, #tpu.memory_space<vmem>>, vector<64x16xf32>
    %cst_15 = arith.constant dense<0.000000e+00> : vector<104x64xf32>
    %15 = tpu.matmul %12, %14, %cst_15 {dimension_numbers = #tpu.dot_dimension_numbers<[1], [1], [0], [0], [0, 0, 1, 0], [], []>} : vector<104x16xf32>, vector<64x16xf32>, vector<104x64xf32> -> vector<104x64xf32>
    %c0_16 = arith.constant 0 : index
    %c0_17 = arith.constant 0 : index
    %16 = vector.load %arg7[%c0_16, %c0_17] : memref<1x64xf32, #tpu.memory_space<vmem>>, vector<1x64xf32>
    %17 = vector.broadcast %16 : vector<1x64xf32> to vector<104x64xf32>
    %18 = arith.addf %15, %17 : vector<104x64xf32>
    %cst_18 = arith.constant 0.000000e+00 : f32
    %19 = vector.broadcast %cst_18 : f32 to vector<104x64xf32>
    %20 = arith.maximumf %18, %19 : vector<104x64xf32>
    %c0_19 = arith.constant 0 : index
    %c0_20 = arith.constant 0 : index
    %21 = vector.load %arg8[%c0_19, %c0_20] : memref<32x64xf32, #tpu.memory_space<vmem>>, vector<32x64xf32>
    %cst_21 = arith.constant dense<0.000000e+00> : vector<104x32xf32>
    %22 = tpu.matmul %20, %21, %cst_21 {dimension_numbers = #tpu.dot_dimension_numbers<[1], [1], [0], [0], [0, 0, 1, 0], [], []>} : vector<104x64xf32>, vector<32x64xf32>, vector<104x32xf32> -> vector<104x32xf32>
    %c0_22 = arith.constant 0 : index
    %c0_23 = arith.constant 0 : index
    %23 = vector.load %arg9[%c0_22, %c0_23] : memref<1x32xf32, #tpu.memory_space<vmem>>, vector<1x32xf32>
    %24 = vector.broadcast %23 : vector<1x32xf32> to vector<104x32xf32>
    %25 = arith.addf %22, %24 : vector<104x32xf32>
    %26 = math.tanh %25 : vector<104x32xf32>
    %c0_24 = arith.constant 0 : index
    %c0_25 = arith.constant 0 : index
    %27 = vector.load %arg11[%c0_24, %c0_25] : memref<104x32xf32, #tpu.memory_space<vmem>>, vector<104x32xf32>
    tpu.vector_store %arg11[%c0_24, %c0_25], %26 {strides = array<i32>} : memref<104x32xf32, #tpu.memory_space<vmem>>, vector<104x32xf32>,
    return
  }
  func.func @transform_0(%arg0: i32) -> (i32, i32) {
    %c0_i32 = arith.constant 0 : i32
    %c0_i32_0 = arith.constant 0 : i32
    return %arg0, %c0_i32 : i32, i32
  }
  func.func @transform_1(%arg0: i32) -> (i32, i32) {
    %c0_i32 = arith.constant 0 : i32
    %c0_i32_0 = arith.constant 0 : i32
    %c0_i32_1 = arith.constant 0 : i32
    return %c0_i32, %c0_i32_0 : i32, i32
  }
  func.func @transform_2(%arg0: i32) -> (i32, i32) {
    %c0_i32 = arith.constant 0 : i32
    %c0_i32_0 = arith.constant 0 : i32
    %c0_i32_1 = arith.constant 0 : i32
    return %c0_i32, %c0_i32_0 : i32, i32
  }
  func.func @transform_3(%arg0: i32) -> (i32, i32) {
    %c0_i32 = arith.constant 0 : i32
    %c0_i32_0 = arith.constant 0 : i32
    %c0_i32_1 = arith.constant 0 : i32
    return %c0_i32, %c0_i32_0 : i32, i32
  }
  func.func @transform_4(%arg0: i32) -> (i32, i32) {
    %c0_i32 = arith.constant 0 : i32
    %c0_i32_0 = arith.constant 0 : i32
    %c0_i32_1 = arith.constant 0 : i32
    return %c0_i32, %c0_i32_0 : i32, i32
  }
  func.func @transform_5(%arg0: i32) -> (i32, i32) {
    %c0_i32 = arith.constant 0 : i32
    %c0_i32_0 = arith.constant 0 : i32
    %c0_i32_1 = arith.constant 0 : i32
    return %c0_i32, %c0_i32_0 : i32, i32
  }
  func.func @transform_6(%arg0: i32) -> (i32, i32) {
    %c0_i32 = arith.constant 0 : i32
    %c0_i32_0 = arith.constant 0 : i32
    %c0_i32_1 = arith.constant 0 : i32
    return %c0_i32, %c0_i32_0 : i32, i32
  }
  func.func @transform_7(%arg0: i32) -> (i32, i32) {
    %c0_i32 = arith.constant 0 : i32
    %c0_i32_0 = arith.constant 0 : i32
    %c0_i32_1 = arith.constant 0 : i32
    return %c0_i32, %c0_i32_0 : i32, i32
  }
  func.func @transform_8(%arg0: i32) -> (i32, i32) {
    %c0_i32 = arith.constant 0 : i32
    %c0_i32_0 = arith.constant 0 : i32
    %c0_i32_1 = arith.constant 0 : i32
    return %c0_i32, %c0_i32_0 : i32, i32
  }
  func.func @transform_9(%arg0: i32) -> (i32, i32) {
    %c0_i32 = arith.constant 0 : i32
    %c0_i32_0 = arith.constant 0 : i32
    return %arg0, %c0_i32 : i32, i32
  }
  func.func @transform_10(%arg0: i32) -> (i32, i32) {
    %c0_i32 = arith.constant 0 : i32
    %c0_i32_0 = arith.constant 0 : i32
    return %arg0, %c0_i32 : i32, i32
  }
}

</mosaic_0001>

<bundles_post_ra>
// kernel: my_ae_forward.1
= control target key start
LH: loop header
LB: loop body
LE: loop exit
PB: predicated region body
PF: predicated region fallthrough
CT: control target
= control target key end

     0   :  { %s1853_s13 = smov 0   ;;  %s2302_s0 = inlined_call_operand.vmem [shape: f32[312,32], index: 0, kind: input, shape index: {}]   ;;  %s2303_s1 = inlined_call_operand.vmem [shape: f32[64,32], index: 1, kind: input, shape index: {}]   ;;  %s2304_s2 = inlined_call_operand.vmem [shape: f32[1,64], index: 2, kind: input, shape index: {}]   ;;  %s2305_s3 = inlined_call_operand.vmem [shape: f32[16,64], index: 3, kind: input, shape index: {}]   ;;  %s2306_s4 = inlined_call_operand.vmem [shape: f32[1,16], index: 4, kind: input, shape index: {}]   ;;  %s2307_s5 = inlined_call_operand.vmem [shape: f32[64,16], index: 5, kind: input, shape index: {}]   ;;  %s2308_s6 = inlined_call_operand.vmem [shape: f32[1,64], index: 6, kind: input, shape index: {}]   ;;  %s2309_s7 = inlined_call_operand.vmem [shape: f32[32,64], index: 7, kind: input, shape index: {}]   ;;  %s2310_s8 = inlined_call_operand.vmem [shape: f32[1,32], index: 8, kind: input, shape index: {}]   ;;  %s2311_s9 = inlined_call_operand.vmem [shape: f32[312,16], index: 9, kind: output, shape index: {0}]   ;;  %s2312_s10 = inlined_call_operand.vmem [shape: f32[312,32], index: 10, kind: output, shape index: {1}]  }
   0x1 LB: > { %s1340_s14 = sadd.s32 4294967295, %s1793_s13   ;;  %p1344_p0 = scmp.ge.s32.totalorder %s1793_s13, 1  ;;  %s1793_s13 = sphi %s1853_s13, %s21_s13  }
   0x2   : > { %p316_p1 = scmp.lt.s32.totalorder %s1793_s13, 4 }
   0x4   : > { %p317_p2 = pnand %p1344_p0, %p316_p1 }
   0x5   : > { %v390_v0 = vld [vmem:[%s2303_s1] sm:$0xff] (!%p317_p2)  ;;  %v391_v1 = vld [vmem:[%s2303_s1 + $0x8] sm:$0xff] (!%p317_p2)  ;;  %vm405_vm0 = vcmask (!%p317_p2), 261120   ;;  %v1795_v2 = vmov (!%p317_p2), 0.0|0.0   ;;  %vm621_vm2 = vcmask (!%p317_p2), 523264   ;;  %vm1796_vm3 = vmmov (!%p317_p2), 0  }
   0x6   : > { %320 = sbr.rel (%p317_p2) target bundleno = 959 (0x3bf), region = 56  ;;  %1702 = vmatprep.subr.bf16.mxu0 (!%p317_p2), %v1795_v2  ;;  %v1703_v3 = vpack.c.bf16 (!%p317_p2), %v391_v1, %v390_v0  ;;  %vm1870_vm1 = vmpackc.low (!%p317_p2), %vm405_vm0, %vm405_vm0  ;;  %1718 = vmatprep.subr.bf16.mxu1 (!%p317_p2), %v1795_v2  ;;  %v1797_v5 = vmov (!%p317_p2), 0.0   ;;  %v612_v6 = vld [vmem:[%s2305_s3] sm:$0xff] (!%p317_p2)  ;;  %v613_v7 = vld [vmem:[%s2305_s3 + $0x8] sm:$0xff] (!%p317_p2)  ;;  %vm797_vm5 = vcmask (!%p317_p2), 130048  }
   0x7   : > { %1518 = vmatprep.mubr.msk.f32.mxu0 (!%p317_p2), %vm1796_vm3, %v1797_v5  ;;  %1561 = vmatprep.mubr.msk.f32.mxu1 (!%p317_p2), %vm1796_vm3, %v1797_v5  ;;  %vm1889_vm4 = vmpackc.low (!%p317_p2), %vm621_vm2, %vm621_vm2  ;;  %v392_v9 = vld [vmem:[%s2303_s1 + $0x10] sm:$0xff] (!%p317_p2)  ;;  %v393_v10 = vld [vmem:[%s2303_s1 + $0x18] sm:$0xff] (!%p317_p2)  ;;  %v1719_v11 = vpack.c.bf16 (!%p317_p2), %v613_v7, %v612_v6  ;;  %s359_s11 = smul.u32 (!%p317_p2), 13, %s1340_s14 }
   0x8   : > { %1705 = vmatpush3.bf16.xpose.msk.msra.mxu0 (!%p317_p2), %vm1870_vm1, %v1703_v3  ;;  %v1707_v12 = vpack.c.bf16 (!%p317_p2), %v393_v10, %v392_v9  ;;  %v394_v13 = vld [vmem:[%s2303_s1 + $0x20] sm:$0xff] (!%p317_p2)  ;;  %v395_v14 = vld [vmem:[%s2303_s1 + $0x28] sm:$0xff] (!%p317_p2)  ;;  %v396_v16 = vld [vmem:[%s2303_s1 + $0x30] sm:$0xff] (!%p317_p2) }
   0x9   : > { %1706 = vmatprep.subr.bf16.mxu0 (!%p317_p2), %v1795_v2  ;;  %1721 = vmatpush3.bf16.xpose.msk.msra.mxu1 (!%p317_p2), %vm1889_vm4, %v1719_v11  ;;  %v1711_v15 = vpack.c.bf16 (!%p317_p2), %v395_v14, %v394_v13  ;;  %p360_p3 = scmp.lt.s32.totalorder (!%p317_p2), %s359_s11, 38  ;;  %v397_v17 = vld [vmem:[%s2303_s1 + $0x38] sm:$0xff] (!%p317_p2)  ;;  %v1989_v32 = vld [vmem:[%s2304_s2] ss:$0 sm:$0xff] (!%p317_p2)  ;;  %v812_v34 = vld [vmem:[%s2307_s5 + $0x8] sm:$0xff] (!%p317_p2) }
   0xa   : > { %1722 = vmatprep.subr.bf16.mxu1 (!%p317_p2), %v1795_v2  ;;  %v1715_v18 = vpack.c.bf16 (!%p317_p2), %v397_v17, %v396_v16  ;;  %v811_v33 = vld [vmem:[%s2307_s5] sm:$0xff] (!%p317_p2)  ;;  %vm2000_vm6 = vmpackc.low (!%p317_p2), %vm797_vm5, %vm797_vm5  ;;  %v813_v45 = vld [vmem:[%s2307_s5 + $0x10] sm:$0xff] (!%p317_p2) }
   0xb   : > { %v1723_v38 = vpack.c.bf16 (!%p317_p2), %v812_v34, %v811_v33  ;;  %v814_v46 = vld [vmem:[%s2307_s5 + $0x18] sm:$0xff] (!%p317_p2)  ;;  %v815_v56 = vld [vmem:[%s2307_s5 + $0x20] sm:$0xff] (!%p317_p2)  ;;  %v816_v57 = vld [vmem:[%s2307_s5 + $0x28] sm:$0xff] (!%p317_p2) }
   0xc   : > { %v1727_v50 = vpack.c.bf16 (!%p317_p2), %v814_v46, %v813_v45  ;;  %v1731_v61 = vpack.c.bf16 (!%p317_p2), %v816_v57, %v815_v56  ;;  %v817_v4 = vld [vmem:[%s2307_s5 + $0x30] sm:$0xff] (!%p317_p2)  ;;  %v818_v6 = vld [vmem:[%s2307_s5 + $0x38] sm:$0xff] (!%p317_p2) }
   0xd   : > { %s2320_s11 = smov (!%p360_p3, %s359_s11), 38  ;;  %v1735_v11 = vpack.c.bf16 %v818_v6, %v817_v4  ;;  %v1034_v40 = vld [vmem:[%s2309_s7 + $0x10] sm:$0xff] }
   0xe   : > { %s1923_s18 = sshll.u32 %s2320_s11, 3 }
   0xf   : > { %s1931_s20 = scalar_lea.vmem %s2302_s0, %s1923_s18  ;;  %s2111_s15 = scalar_lea.vmem %s2311_s9, %s1923_s18 }
  0x10   : > { %1709 = vmatpush3.bf16.xpose.msk.msra.mxu0 %vm1870_vm1, %v1707_v12  ;;  %v377_v19 = vld [vmem:[%s1931_s20] sm:$0xff]  ;;  %v378_v20 = vld [vmem:[%s1931_s20 + $0x8] sm:$0xff]  ;;  %v379_v21 = vld [vmem:[%s1931_s20 + $0x10] sm:$0xff]  ;;  %s2261_s22 = scalar_lea.vmem %s2312_s10, %s1923_s18 }
  0x11   : > { %1710 = vmatprep.subr.bf16.mxu0 %v1795_v2  ;;  %v380_v22 = vld [vmem:[%s1931_s20 + $0x18] sm:$0xff]  ;;  %v381_v23 = vld [vmem:[%s1931_s20 + $0x20] sm:$0xff]  ;;  %v382_v24 = vld [vmem:[%s1931_s20 + $0x28] sm:$0xff] }
  0x12   : > { %v383_v25 = vld [vmem:[%s1931_s20 + $0x30] sm:$0xff]  ;;  %v384_v26 = vld [vmem:[%s1931_s20 + $0x38] sm:$0xff]  ;;  %v385_v27 = vld [vmem:[%s1931_s20 + $0x40] sm:$0xff] }
  0x13   : > { %v386_v28 = vld [vmem:[%s1931_s20 + $0x48] sm:$0xff]  ;;  %v387_v29 = vld [vmem:[%s1931_s20 + $0x50] sm:$0xff]  ;;  %v388_v30 = vld [vmem:[%s1931_s20 + $0x58] sm:$0xff] }
  0x14   : > { %v389_v31 = vld [vmem:[%s1931_s20 + $0x60] sm:$0xff] }
  0x18   : > { %1713 = vmatpush3.bf16.xpose.msk.msra.mxu0 %vm1870_vm1, %v1711_v15 }
  0x19   : > { %1714 = vmatprep.subr.bf16.mxu0 %v1795_v2 }
  0x20   : > { %1717 = vmatpush3.bf16.xpose.msk.msra.mxu0 %vm1870_vm1, %v1715_v18 }
  0x21   : > { %1738 = vmatprep.subr.bf16.mxu0 %v1795_v2 }
  0x27   : > { %1519 = vmatmul.mubr.msk.f32.vlgmr.msra.gmra.mrb[0].mxu0 %vm405_vm0, %v377_v19 }
  0x28   : > { %1521 = vmatprep.mubr.msk.f32.mxu0 %vm1796_vm3, %v1797_v5 }
  0x2b   : > { %1522 = vmatmul.mubr.msk.f32.gmra.mrb[2].mxu0 %vm405_vm0, %v378_v20 }
  0x2c   : > { %1524 = vmatprep.mubr.msk.f32.mxu0 %vm1796_vm3, %v1797_v5 }
  0x2f   : > { %1525 = vmatmul.mubr.msk.f32.gmra.mrb[4].mxu0 %vm405_vm0, %v379_v21 }
  0x30   : > { %1527 = vmatprep.mubr.msk.f32.mxu0 %vm1796_vm3, %v1797_v5 }
  0x33   : > { %1528 = vmatmul.mubr.msk.f32.gmra.mrb[6].mxu0 %vm405_vm0, %v380_v22 }
  0x34   : > { %1530 = vmatprep.mubr.msk.f32.mxu0 %vm1796_vm3, %v1797_v5 }
  0x37   : > { %1531 = vmatmul.mubr.msk.f32.gmra.mrb[8].mxu0 %vm405_vm0, %v381_v23 }
  0x38   : > { %1533 = vmatprep.mubr.msk.f32.mxu0 %vm1796_vm3, %v1797_v5 }
  0x3b   : > { %1534 = vmatmul.mubr.msk.f32.gmra.mrb[10].mxu0 %vm405_vm0, %v382_v24 }
  0x3c   : > { %1536 = vmatprep.mubr.msk.f32.mxu0 %vm1796_vm3, %v1797_v5 }
  0x3f   : > { %1537 = vmatmul.mubr.msk.f32.gmra.mrb[12].mxu0 %vm405_vm0, %v383_v25 }
  0x40   : > { %1539 = vmatprep.mubr.msk.f32.mxu0 %vm1796_vm3, %v1797_v5 }
  0x43   : > { %1540 = vmatmul.mubr.msk.f32.gmra.mrb[14].mxu0 %vm405_vm0, %v384_v26 }
  0x44   : > { %1542 = vmatprep.mubr.msk.f32.mxu0 %vm1796_vm3, %v1797_v5 }
  0x47   : > { %1543 = vmatmul.mubr.msk.f32.gmra.mrb[16].mxu0 %vm405_vm0, %v385_v27 }
  0x48   : > { %1545 = vmatprep.mubr.msk.f32.mxu0 %vm1796_vm3, %v1797_v5 }
  0x4b   : > { %1546 = vmatmul.mubr.msk.f32.gmra.mrb[18].mxu0 %vm405_vm0, %v386_v28 }
  0x4c   : > { %1548 = vmatprep.mubr.msk.f32.mxu0 %vm1796_vm3, %v1797_v5 }
  0x4f   : > { %1549 = vmatmul.mubr.msk.f32.gmra.mrb[20].mxu0 %vm405_vm0, %v387_v29 }
  0x50   : > { %1551 = vmatprep.mubr.msk.f32.mxu0 %vm1796_vm3, %v1797_v5 }
  0x53   : > { %1552 = vmatmul.mubr.msk.f32.gmra.mrb[22].mxu0 %vm405_vm0, %v388_v30 }
  0x54   : > { %1554 = vmatprep.mubr.msk.f32.mxu0 %vm1796_vm3, %v1797_v5 }
  0x57   : > { %1555 = vmatmul.mubr.msk.f32.gmra.mrb[24].mxu0 %vm405_vm0, %v389_v31 }
  0x58   : > { %1663 = vmatprep.mubr.msk.f32.mxu0 %vm1796_vm3, %v1797_v5 }
  0xfa   : > { %v535_v35 = vpop.f32.mrb[0].mxu0 }
  0xfb   : > { %v536_v36 = vadd.f32 %v1989_v32, %v535_v35  ;;  %v1520_v37 = vpop.f32.mrb[1].mxu0 }
  0xfd   : > { %v599_v39 = vmax.f32 %v536_v36, 0.0 }
  0xfe   : > { %v540_v41 = vpop.f32.mrb[2].mxu0 }
  0xff   : > { %v541_v42 = vadd.f32 %v1989_v32, %v540_v41  ;;  %v1523_v43 = vpop.f32.mrb[3].mxu0  ;;  %1562 = vmatmul.mubr.msk.f32.vlgmr.msra.gmra.mrb[0].mxu1 %vm621_vm2, %v599_v39  ;;  %v1035_v41 = vld [vmem:[%s2309_s7 + $0x18] sm:$0xff] }
 0x100   : > { %1564 = vmatprep.mubr.msk.f32.mxu1 %vm1796_vm3, %v1797_v5  ;;  %1725 = vmatpush3.bf16.xpose.msk.msra.mxu1 %vm2000_vm6, %v1723_v38  ;;  %v1032_v38 = vld [vmem:[%s2309_s7] sm:$0xff] }
 0x101   : > { %v600_v44 = vmax.f32 %v541_v42, 0.0  ;;  %1726 = vmatprep.subr.bf16.mxu1 %v1795_v2  ;;  %v1743_v42 = vpack.c.bf16 %v1035_v41, %v1034_v40  ;;  %v2105_v43 = vld [vmem:[%s2306_s4] ss:$0 sm:$0xff] }
 0x102   : > { %v545_v47 = vpop.f32.mrb[4].mxu0 }
 0x103   : > { %v546_v48 = vadd.f32 %v1989_v32, %v545_v47  ;;  %v1526_v49 = vpop.f32.mrb[5].mxu0  ;;  %1565 = vmatmul.mubr.msk.f32.gmra.mrb[2].mxu1 %vm621_vm2, %v600_v44 }
 0x104   : > { %1567 = vmatprep.mubr.msk.f32.mxu1 %vm1796_vm3, %v1797_v5 }
 0x105   : > { %v601_v51 = vmax.f32 %v546_v48, 0.0 }
 0x106   : > { %v550_v52 = vpop.f32.mrb[6].mxu0 }
 0x107   : > { %v551_v53 = vadd.f32 %v1989_v32, %v550_v52  ;;  %v1529_v54 = vpop.f32.mrb[7].mxu0  ;;  %1568 = vmatmul.mubr.msk.f32.gmra.mrb[4].mxu1 %vm621_vm2, %v601_v51 }
 0x108   : > { %1570 = vmatprep.mubr.msk.f32.mxu1 %vm1796_vm3, %v1797_v5  ;;  %1729 = vmatpush3.bf16.xpose.msk.msra.mxu1 %vm2000_vm6, %v1727_v50 }
 0x109   : > { %v602_v55 = vmax.f32 %v551_v53, 0.0  ;;  %1730 = vmatprep.subr.bf16.mxu1 %v1795_v2 }
 0x10a   : > { %v555_v58 = vpop.f32.mrb[8].mxu0 }
 0x10b   : > { %v556_v59 = vadd.f32 %v1989_v32, %v555_v58  ;;  %v1532_v60 = vpop.f32.mrb[9].mxu0  ;;  %1571 = vmatmul.mubr.msk.f32.gmra.mrb[6].mxu1 %vm621_vm2, %v602_v55 }
 0x10c   : > { %1573 = vmatprep.mubr.msk.f32.mxu1 %vm1796_vm3, %v1797_v5 }
 0x10d   : > { %v603_v62 = vmax.f32 %v556_v59, 0.0 }
 0x10e   : > { %v560_v63 = vpop.f32.mrb[10].mxu0 }
 0x10f   : > { %v561_v0 = vadd.f32 %v1989_v32, %v560_v63  ;;  %v1535_v1 = vpop.f32.mrb[11].mxu0  ;;  %1574 = vmatmul.mubr.msk.f32.gmra.mrb[8].mxu1 %vm621_vm2, %v603_v62 }
 0x110   : > { %1576 = vmatprep.mubr.msk.f32.mxu1 %vm1796_vm3, %v1797_v5  ;;  %1733 = vmatpush3.bf16.xpose.msk.msra.mxu1 %vm2000_vm6, %v1731_v61 }
 0x111   : > { %v604_v3 = vmax.f32 %v561_v0, 0.0  ;;  %1734 = vmatprep.subr.bf16.mxu1 %v1795_v2 }
 0x112   : > { %v565_v7 = vpop.f32.mrb[12].mxu0 }
 0x113   : > { %v566_v9 = vadd.f32 %v1989_v32, %v565_v7  ;;  %v1538_v10 = vpop.f32.mrb[13].mxu0  ;;  %1577 = vmatmul.mubr.msk.f32.gmra.mrb[10].mxu1 %vm621_vm2, %v604_v3 }
 0x114   : > { %1579 = vmatprep.mubr.msk.f32.mxu1 %vm1796_vm3, %v1797_v5 }
 0x115   : > { %v605_v12 = vmax.f32 %v566_v9, 0.0 }
 0x116   : > { %v570_v13 = vpop.f32.mrb[14].mxu0 }
 0x117   : > { %v571_v14 = vadd.f32 %v1989_v32, %v570_v13  ;;  %v1541_v15 = vpop.f32.mrb[15].mxu0  ;;  %1580 = vmatmul.mubr.msk.f32.gmra.mrb[12].mxu1 %vm621_vm2, %v605_v12 }
 0x118   : > { %1582 = vmatprep.mubr.msk.f32.mxu1 %vm1796_vm3, %v1797_v5  ;;  %1737 = vmatpush3.bf16.xpose.msk.msra.mxu1 %vm2000_vm6, %v1735_v11 }
 0x119   : > { %v606_v16 = vmax.f32 %v571_v14, 0.0  ;;  %1746 = vmatprep.subr.bf16.mxu1 %v1795_v2 }
 0x11a   : > { %v575_v17 = vpop.f32.mrb[16].mxu0 }
 0x11b   : > { %v576_v18 = vadd.f32 %v1989_v32, %v575_v17  ;;  %v1544_v19 = vpop.f32.mrb[17].mxu0  ;;  %1583 = vmatmul.mubr.msk.f32.gmra.mrb[14].mxu1 %vm621_vm2, %v606_v16 }
 0x11c   : > { %1585 = vmatprep.mubr.msk.f32.mxu1 %vm1796_vm3, %v1797_v5 }
 0x11d   : > { %v607_v20 = vmax.f32 %v576_v18, 0.0 }
 0x11e   : > { %v580_v21 = vpop.f32.mrb[18].mxu0 }
 0x11f   : > { %v581_v22 = vadd.f32 %v1989_v32, %v580_v21  ;;  %v1547_v23 = vpop.f32.mrb[19].mxu0  ;;  %1586 = vmatmul.mubr.msk.f32.gmra.mrb[16].mxu1 %vm621_vm2, %v607_v20  ;;  %v2199_v20 = vld [vmem:[%s2308_s6] ss:$0 sm:$0xff] }
 0x120   : > { %1588 = vmatprep.mubr.msk.f32.mxu1 %vm1796_vm3, %v1797_v5 }
 0x121   : > { %v608_v24 = vmax.f32 %v581_v22, 0.0 }
 0x122   : > { %v585_v25 = vpop.f32.mrb[20].mxu0 }
 0x123   : > { %v586_v26 = vadd.f32 %v1989_v32, %v585_v25  ;;  %v1550_v27 = vpop.f32.mrb[21].mxu0  ;;  %1589 = vmatmul.mubr.msk.f32.gmra.mrb[18].mxu1 %vm621_vm2, %v608_v24 }
 0x124   : > { %1591 = vmatprep.mubr.msk.f32.mxu1 %vm1796_vm3, %v1797_v5 }
 0x125   : > { %v609_v28 = vmax.f32 %v586_v26, 0.0 }
 0x126   : > { %v590_v29 = vpop.f32.mrb[22].mxu0 }
 0x127   : > { %v591_v30 = vadd.f32 %v1989_v32, %v590_v29  ;;  %v1553_v31 = vpop.f32.mrb[23].mxu0  ;;  %1592 = vmatmul.mubr.msk.f32.gmra.mrb[20].mxu1 %vm621_vm2, %v609_v28 }
 0x128   : > { %1594 = vmatprep.mubr.msk.f32.mxu1 %vm1796_vm3, %v1797_v5 }
 0x129   : > { %v610_v33 = vmax.f32 %v591_v30, 0.0 }
 0x12a   : > { %v595_v34 = vpop.f32.mrb[24].mxu0 }
 0x12b   : > { %v596_v35 = vadd.f32 %v1989_v32, %v595_v34  ;;  %v1556_v36 = vpop.f32.mrb[25].mxu0  ;;  %1595 = vmatmul.mubr.msk.f32.gmra.mrb[22].mxu1 %vm621_vm2, %v610_v33  ;;  %v1033_v32 = vld [vmem:[%s2309_s7 + $0x8] sm:$0xff] }
 0x12c   : > { %1597 = vmatprep.mubr.msk.f32.mxu1 %vm1796_vm3, %v1797_v5  ;;  %v1739_v39 = vpack.c.bf16 %v1033_v32, %v1032_v38 }
 0x12d   : > { %v611_v37 = vmax.f32 %v596_v35, 0.0 }
 0x12e   : > { %1741 = vmatpush3.bf16.xpose.msk.msra.mxu0 %vm1889_vm4, %v1739_v39 }
 0x12f   : > { %1598 = vmatmul.mubr.msk.f32.gmra.mrb[24].mxu1 %vm621_vm2, %v611_v37  ;;  %1742 = vmatprep.subr.bf16.mxu0 %v1795_v2 }
 0x130   : > { %1616 = vmatprep.mubr.msk.f32.mxu1 %vm1796_vm3, %v1797_v5 }
 0x136   : > { %1745 = vmatpush3.bf16.xpose.msk.msra.mxu0 %vm1889_vm4, %v1743_v42 }
 0x1d2   : > { %v733_v44 = vpop.f32.mrb[0].mxu1 }
 0x1d3   : > { %v734_v45 = vadd.f32 %v2105_v43, %v733_v44  ;;  %v1563_v46 = vpop.f32.mrb[1].mxu1 }
 0x1d5   : > { %798 = vst.msk [vmem:[%s2111_s15] sm:$0xff] %vm797_vm5, %v734_v45  ;;  %1617 = vmatmul.mubr.msk.f32.vlgmr.msra.gmra.mrb[26].mxu1 %vm797_vm5, %v734_v45 }
 0x1d6   : > { %v738_v47 = vpop.f32.mrb[2].mxu1  ;;  %1619 = vmatprep.mubr.msk.f32.mxu1 %vm1796_vm3, %v1797_v5  ;;  %1748 = vmatpush3.bf16.xpose.msk.msra.mxu1 %vm1889_vm4, %v1739_v39 }
 0x1d7   : > { %v739_v48 = vadd.f32 %v2105_v43, %v738_v47  ;;  %v1566_v49 = vpop.f32.mrb[3].mxu1  ;;  %1747 = vmatprep.subr.bf16.mxu1 %v1795_v2 }
 0x1d9   : > { %799 = vst.msk [vmem:[%s2111_s15 + $0x8] sm:$0xff] %vm797_vm5, %v739_v48  ;;  %1620 = vmatmul.mubr.msk.f32.gmra.mrb[28].mxu1 %vm797_vm5, %v739_v48 }
 0x1da   : > { %v743_v50 = vpop.f32.mrb[4].mxu1  ;;  %1622 = vmatprep.mubr.msk.f32.mxu1 %vm1796_vm3, %v1797_v5 }
 0x1db   : > { %v744_v51 = vadd.f32 %v2105_v43, %v743_v50  ;;  %v1569_v52 = vpop.f32.mrb[5].mxu1 }
 0x1dd   : > { %800 = vst.msk [vmem:[%s2111_s15 + $0x10] sm:$0xff] %vm797_vm5, %v744_v51  ;;  %1623 = vmatmul.mubr.msk.f32.gmra.mrb[30].mxu1 %vm797_vm5, %v744_v51 }
 0x1de   : > { %v748_v53 = vpop.f32.mrb[6].mxu1  ;;  %1625 = vmatprep.mubr.msk.f32.mxu1 %vm1796_vm3, %v1797_v5  ;;  %1749 = vmatpush3.bf16.xpose.msk.msra.mxu1 %vm1889_vm4, %v1743_v42 }
 0x1df   : > { %v749_v2 = vadd.f32 %v2105_v43, %v748_v53  ;;  %v1572_v54 = vpop.f32.mrb[7].mxu1 }
 0x1e1   : > { %801 = vst.msk [vmem:[%s2111_s15 + $0x18] sm:$0xff] %vm797_vm5, %v749_v2  ;;  %1626 = vmatmul.mubr.msk.f32.gmra.mrb[32].mxu1 %vm797_vm5, %v749_v2 }
 0x1e2   : > { %v753_v55 = vpop.f32.mrb[8].mxu1  ;;  %1628 = vmatprep.mubr.msk.f32.mxu1 %vm1796_vm3, %v1797_v5 }
 0x1e3   : > { %v754_v56 = vadd.f32 %v2105_v43, %v753_v55  ;;  %v1575_v57 = vpop.f32.mrb[9].mxu1 }
 0x1e5   : > { %802 = vst.msk [vmem:[%s2111_s15 + $0x20] sm:$0xff] %vm797_vm5, %v754_v56  ;;  %1629 = vmatmul.mubr.msk.f32.gmra.mrb[34].mxu1 %vm797_vm5, %v754_v56 }
 0x1e6   : > { %v758_v8 = vpop.f32.mrb[10].mxu1  ;;  %1631 = vmatprep.mubr.msk.f32.mxu1 %vm1796_vm3, %v1797_v5 }
 0x1e7   : > { %v759_v58 = vadd.f32 %v2105_v43, %v758_v8  ;;  %v1578_v59 = vpop.f32.mrb[11].mxu1 }
 0x1e9   : > { %803 = vst.msk [vmem:[%s2111_s15 + $0x28] sm:$0xff] %vm797_vm5, %v759_v58  ;;  %1632 = vmatmul.mubr.msk.f32.gmra.mrb[36].mxu1 %vm797_vm5, %v759_v58 }
 0x1ea   : > { %v763_v60 = vpop.f32.mrb[12].mxu1  ;;  %1634 = vmatprep.mubr.msk.f32.mxu1 %vm1796_vm3, %v1797_v5 }
 0x1eb   : > { %v764_v61 = vadd.f32 %v2105_v43, %v763_v60  ;;  %v1581_v62 = vpop.f32.mrb[13].mxu1 }
 0x1ed   : > { %804 = vst.msk [vmem:[%s2111_s15 + $0x30] sm:$0xff] %vm797_vm5, %v764_v61  ;;  %1635 = vmatmul.mubr.msk.f32.gmra.mrb[38].mxu1 %vm797_vm5, %v764_v61 }
 0x1ee   : > { %v768_v63 = vpop.f32.mrb[14].mxu1  ;;  %1637 = vmatprep.mubr.msk.f32.mxu1 %vm1796_vm3, %v1797_v5 }
 0x1ef   : > { %v769_v0 = vadd.f32 %v2105_v43, %v768_v63  ;;  %v1584_v1 = vpop.f32.mrb[15].mxu1 }
 0x1f1   : > { %805 = vst.msk [vmem:[%s2111_s15 + $0x38] sm:$0xff] %vm797_vm5, %v769_v0  ;;  %1638 = vmatmul.mubr.msk.f32.gmra.mrb[40].mxu1 %vm797_vm5, %v769_v0 }
 0x1f2   : > { %v773_v3 = vpop.f32.mrb[16].mxu1  ;;  %1640 = vmatprep.mubr.msk.f32.mxu1 %vm1796_vm3, %v1797_v5 }
 0x1f3   : > { %v774_v4 = vadd.f32 %v2105_v43, %v773_v3  ;;  %v1587_v6 = vpop.f32.mrb[17].mxu1 }
 0x1f5   : > { %806 = vst.msk [vmem:[%s2111_s15 + $0x40] sm:$0xff] %vm797_vm5, %v774_v4  ;;  %1641 = vmatmul.mubr.msk.f32.gmra.mrb[42].mxu1 %vm797_vm5, %v774_v4 }
 0x1f6   : > { %v778_v7 = vpop.f32.mrb[18].mxu1  ;;  %1643 = vmatprep.mubr.msk.f32.mxu1 %vm1796_vm3, %v1797_v5 }
 0x1f7   : > { %v779_v9 = vadd.f32 %v2105_v43, %v778_v7  ;;  %v1590_v10 = vpop.f32.mrb[19].mxu1 }
 0x1f8   : > { %v2252_v10 = vld [vmem:[%s2310_s8] ss:$0 sm:$0xff] }
 0x1f9   : > { %807 = vst.msk [vmem:[%s2111_s15 + $0x48] sm:$0xff] %vm797_vm5, %v779_v9  ;;  %1644 = vmatmul.mubr.msk.f32.gmra.mrb[44].mxu1 %vm797_vm5, %v779_v9 }
 0x1fa   : > { %v783_v11 = vpop.f32.mrb[20].mxu1  ;;  %1646 = vmatprep.mubr.msk.f32.mxu1 %vm1796_vm3, %v1797_v5 }
 0x1fb   : > { %v784_v12 = vadd.f32 %v2105_v43, %v783_v11  ;;  %v1593_v13 = vpop.f32.mrb[21].mxu1 }
 0x1fd   : > { %808 = vst.msk [vmem:[%s2111_s15 + $0x50] sm:$0xff] %vm797_vm5, %v784_v12  ;;  %1647 = vmatmul.mubr.msk.f32.gmra.mrb[46].mxu1 %vm797_vm5, %v784_v12 }
 0x1fe   : > { %v788_v14 = vpop.f32.mrb[22].mxu1  ;;  %1649 = vmatprep.mubr.msk.f32.mxu1 %vm1796_vm3, %v1797_v5 }
 0x1ff   : > { %v789_v15 = vadd.f32 %v2105_v43, %v788_v14  ;;  %v1596_v16 = vpop.f32.mrb[23].mxu1 }
 0x201   : > { %809 = vst.msk [vmem:[%s2111_s15 + $0x58] sm:$0xff] %vm797_vm5, %v789_v15  ;;  %1650 = vmatmul.mubr.msk.f32.gmra.mrb[48].mxu1 %vm797_vm5, %v789_v15 }
 0x202   : > { %v793_v17 = vpop.f32.mrb[24].mxu1  ;;  %1652 = vmatprep.mubr.msk.f32.mxu1 %vm1796_vm3, %v1797_v5 }
 0x203   : > { %v794_v18 = vadd.f32 %v2105_v43, %v793_v17  ;;  %v1599_v19 = vpop.f32.mrb[25].mxu1 }
 0x205   : > { %810 = vst.msk [vmem:[%s2111_s15 + $0x60] sm:$0xff] %vm797_vm5, %v794_v18  ;;  %1653 = vmatmul.mubr.msk.f32.gmra.mrb[50].mxu1 %vm797_vm5, %v794_v18 }
 0x206   : > { %1693 = vmatprep.mubr.msk.f32.mxu1 %vm1796_vm3, %v1797_v5 }
 0x2a8   : > { %v955_v21 = vpop.f32.mrb[26].mxu1 }
 0x2a9   : > { %v956_v22 = vadd.f32 %v2199_v20, %v955_v21  ;;  %v1618_v23 = vpop.f32.mrb[27].mxu1 }
 0x2ab   : > { %v1019_v24 = vmax.f32 %v956_v22, 0.0 }
 0x2ac   : > { %v960_v25 = vpop.f32.mrb[28].mxu1 }
 0x2ad   : > { %v961_v26 = vadd.f32 %v2199_v20, %v960_v25  ;;  %v1621_v27 = vpop.f32.mrb[29].mxu1  ;;  %1664 = vmatmul.mubr.msk.f32.vlgmr.msra.gmra.mrb[26].mxu0 %vm621_vm2, %v1019_v24 }
 0x2ae   : > { %1666 = vmatprep.mubr.msk.f32.mxu0 %vm1796_vm3, %v1797_v5 }
 0x2af   : > { %v1020_v28 = vmax.f32 %v961_v26, 0.0 }
 0x2b0   : > { %v965_v29 = vpop.f32.mrb[30].mxu1 }
 0x2b1   : > { %v966_v30 = vadd.f32 %v2199_v20, %v965_v29  ;;  %v1624_v31 = vpop.f32.mrb[31].mxu1  ;;  %1667 = vmatmul.mubr.msk.f32.gmra.mrb[28].mxu0 %vm621_vm2, %v1020_v28 }
 0x2b2   : > { %1669 = vmatprep.mubr.msk.f32.mxu0 %vm1796_vm3, %v1797_v5 }
 0x2b3   : > { %v1021_v33 = vmax.f32 %v966_v30, 0.0 }
 0x2b4   : > { %v970_v34 = vpop.f32.mrb[32].mxu1 }
 0x2b5   : > { %v971_v35 = vadd.f32 %v2199_v20, %v970_v34  ;;  %v1627_v36 = vpop.f32.mrb[33].mxu1  ;;  %1670 = vmatmul.mubr.msk.f32.gmra.mrb[30].mxu0 %vm621_vm2, %v1021_v33 }
 0x2b6   : > { %1672 = vmatprep.mubr.msk.f32.mxu0 %vm1796_vm3, %v1797_v5 }
 0x2b7   : > { %v1022_v37 = vmax.f32 %v971_v35, 0.0 }
 0x2b8   : > { %v975_v38 = vpop.f32.mrb[34].mxu1 }
 0x2b9   : > { %v976_v32 = vadd.f32 %v2199_v20, %v975_v38  ;;  %v1630_v39 = vpop.f32.mrb[35].mxu1  ;;  %1673 = vmatmul.mubr.msk.f32.gmra.mrb[32].mxu0 %vm621_vm2, %v1022_v37 }
 0x2ba   : > { %1675 = vmatprep.mubr.msk.f32.mxu0 %vm1796_vm3, %v1797_v5 }
 0x2bb   : > { %v1023_v40 = vmax.f32 %v976_v32, 0.0 }
 0x2bc   : > { %v980_v41 = vpop.f32.mrb[36].mxu1 }
 0x2bd   : > { %v981_v42 = vadd.f32 %v2199_v20, %v980_v41  ;;  %v1633_v43 = vpop.f32.mrb[37].mxu1  ;;  %1676 = vmatmul.mubr.msk.f32.gmra.mrb[34].mxu0 %vm621_vm2, %v1023_v40 }
 0x2be   : > { %1678 = vmatprep.mubr.msk.f32.mxu0 %vm1796_vm3, %v1797_v5 }
 0x2bf   : > { %v1024_v44 = vmax.f32 %v981_v42, 0.0 }
 0x2c0   : > { %v985_v45 = vpop.f32.mrb[38].mxu1 }
 0x2c1   : > { %v986_v46 = vadd.f32 %v2199_v20, %v985_v45  ;;  %v1636_v47 = vpop.f32.mrb[39].mxu1  ;;  %1679 = vmatmul.mubr.msk.f32.gmra.mrb[36].mxu0 %vm621_vm2, %v1024_v44 }
 0x2c2   : > { %1681 = vmatprep.mubr.msk.f32.mxu0 %vm1796_vm3, %v1797_v5 }
 0x2c3   : > { %v1025_v48 = vmax.f32 %v986_v46, 0.0 }
 0x2c4   : > { %v990_v49 = vpop.f32.mrb[40].mxu1 }
 0x2c5   : > { %v991_v50 = vadd.f32 %v2199_v20, %v990_v49  ;;  %v1639_v51 = vpop.f32.mrb[41].mxu1  ;;  %1682 = vmatmul.mubr.msk.f32.gmra.mrb[38].mxu0 %vm621_vm2, %v1025_v48 }
 0x2c6   : > { %1684 = vmatprep.mubr.msk.f32.mxu0 %vm1796_vm3, %v1797_v5 }
 0x2c7   : > { %v1026_v52 = vmax.f32 %v991_v50, 0.0 }
 0x2c8   : > { %v995_v53 = vpop.f32.mrb[42].mxu1 }
 0x2c9   : > { %v996_v2 = vadd.f32 %v2199_v20, %v995_v53  ;;  %v1642_v54 = vpop.f32.mrb[43].mxu1  ;;  %1685 = vmatmul.mubr.msk.f32.gmra.mrb[40].mxu0 %vm621_vm2, %v1026_v52 }
 0x2ca   : > { %1687 = vmatprep.mubr.msk.f32.mxu0 %vm1796_vm3, %v1797_v5 }
 0x2cb   : > { %v1027_v55 = vmax.f32 %v996_v2, 0.0 }
 0x2cc   : > { %v1000_v56 = vpop.f32.mrb[44].mxu1 }
 0x2cd   : > { %v1001_v57 = vadd.f32 %v2199_v20, %v1000_v56  ;;  %v1645_v8 = vpop.f32.mrb[45].mxu1  ;;  %1688 = vmatmul.mubr.msk.f32.gmra.mrb[42].mxu0 %vm621_vm2, %v1027_v55 }
 0x2ce   : > { %1690 = vmatprep.mubr.msk.f32.mxu0 %vm1796_vm3, %v1797_v5 }
 0x2cf   : > { %v1028_v58 = vmax.f32 %v1001_v57, 0.0 }
 0x2d0   : > { %v1005_v59 = vpop.f32.mrb[46].mxu1 }
 0x2d1   : > { %v1006_v60 = vadd.f32 %v2199_v20, %v1005_v59  ;;  %v1648_v61 = vpop.f32.mrb[47].mxu1  ;;  %1691 = vmatmul.mubr.msk.f32.gmra.mrb[44].mxu0 %vm621_vm2, %v1028_v58 }
 0x2d3   : > { %v1029_v62 = vmax.f32 %v1006_v60, 0.0 }
 0x2d4   : > { %v1010_v63 = vpop.f32.mrb[48].mxu1 }
 0x2d5   : > { %v1011_v0 = vadd.f32 %v2199_v20, %v1010_v63  ;;  %v1651_v1 = vpop.f32.mrb[49].mxu1  ;;  %1694 = vmatmul.mubr.msk.f32.vlgmr.msra.gmra.mrb[52].mxu1 %vm621_vm2, %v1029_v62 }
 0x2d6   : > { %1696 = vmatprep.mubr.msk.f32.mxu1 %vm1796_vm3, %v1797_v5 }
 0x2d7   : > { %v1030_v3 = vmax.f32 %v1011_v0, 0.0 }
 0x2d8   : > { %v1015_v4 = vpop.f32.mrb[50].mxu1 }
 0x2d9   : > { %v1016_v6 = vadd.f32 %v2199_v20, %v1015_v4  ;;  %v1654_v7 = vpop.f32.mrb[51].mxu1  ;;  %1697 = vmatmul.mubr.msk.f32.gmra.mrb[54].mxu1 %vm621_vm2, %v1030_v3 }
 0x2da   : > { %1699 = vmatprep.mubr.msk.f32.mxu1 %vm1796_vm3, %v1797_v5 }
 0x2db   : > { %v1031_v9 = vmax.f32 %v1016_v6, 0.0 }
 0x2dd   : > { %1700 = vmatmul.mubr.msk.f32.gmra.mrb[56].mxu1 %vm621_vm2, %v1031_v9 }
 0x380   : > { %v1160_v11 = vpop.f32.mrb[26].mxu0 }
 0x381   : > { %v1161_v12 = vadd.f32 %v2252_v10, %v1160_v11  ;;  %v1665_v13 = vpop.f32.mrb[27].mxu0 }
 0x383   : > { %1761 = vtanh.f32 %v1161_v12 }
 0x384   : > { %v1165_v14 = vpop.f32.mrb[28].mxu0 }
 0x385   : > { %v1166_v15 = vadd.f32 %v2252_v10, %v1165_v14  ;;  %v1668_v16 = vpop.f32.mrb[29].mxu0 }
 0x387   : > { %1763 = vtanh.f32 %v1166_v15 }
 0x388   : > { %v1170_v17 = vpop.f32.mrb[30].mxu0 }
 0x389   : > { %v1171_v5 = vadd.f32 %v2252_v10, %v1170_v17  ;;  %v1671_v18 = vpop.f32.mrb[31].mxu0 }
 0x38b   : > { %1765 = vtanh.f32 %v1171_v5 }
 0x38c   : > { %v1175_v19 = vpop.f32.mrb[32].mxu0 }
 0x38d   : > { %v1762_v20 = vpop.eup %1761  ;;  %v1176_v21 = vadd.f32 %v2252_v10, %v1175_v19  ;;  %v1674_v22 = vpop.f32.mrb[33].mxu0 }
 0x38e   : > { %1237 = vst.msk [vmem:[%s2261_s22] sm:$0xff] %vm405_vm0, %v1762_v20 }
 0x38f   : > { %1767 = vtanh.f32 %v1176_v21 }
 0x390   : > { %v1180_v23 = vpop.f32.mrb[34].mxu0 }
 0x391   : > { %v1764_v24 = vpop.eup %1763  ;;  %v1181_v25 = vadd.f32 %v2252_v10, %v1180_v23  ;;  %v1677_v26 = vpop.f32.mrb[35].mxu0 }
 0x392   : > { %1238 = vst.msk [vmem:[%s2261_s22 + $0x8] sm:$0xff] %vm405_vm0, %v1764_v24 }
 0x393   : > { %1769 = vtanh.f32 %v1181_v25 }
 0x394   : > { %v1185_v27 = vpop.f32.mrb[36].mxu0 }
 0x395   : > { %v1766_v28 = vpop.eup %1765  ;;  %v1186_v29 = vadd.f32 %v2252_v10, %v1185_v27  ;;  %v1680_v30 = vpop.f32.mrb[37].mxu0 }
 0x396   : > { %1239 = vst.msk [vmem:[%s2261_s22 + $0x10] sm:$0xff] %vm405_vm0, %v1766_v28 }
 0x397   : > { %1771 = vtanh.f32 %v1186_v29 }
 0x398   : > { %v1190_v31 = vpop.f32.mrb[38].mxu0 }
 0x399   : > { %v1768_v33 = vpop.eup %1767  ;;  %v1191_v34 = vadd.f32 %v2252_v10, %v1190_v31  ;;  %v1683_v35 = vpop.f32.mrb[39].mxu0 }
 0x39a   : > { %1240 = vst.msk [vmem:[%s2261_s22 + $0x18] sm:$0xff] %vm405_vm0, %v1768_v33 }
 0x39b   : > { %1773 = vtanh.f32 %v1191_v34 }
 0x39c   : > { %v1195_v36 = vpop.f32.mrb[40].mxu0 }
 0x39d   : > { %v1770_v37 = vpop.eup %1769  ;;  %v1196_v38 = vadd.f32 %v2252_v10, %v1195_v36  ;;  %v1686_v32 = vpop.f32.mrb[41].mxu0 }
 0x39e   : > { %1241 = vst.msk [vmem:[%s2261_s22 + $0x20] sm:$0xff] %vm405_vm0, %v1770_v37 }
 0x39f   : > { %1775 = vtanh.f32 %v1196_v38 }
 0x3a0   : > { %v1200_v39 = vpop.f32.mrb[42].mxu0 }
 0x3a1   : > { %v1772_v40 = vpop.eup %1771  ;;  %v1201_v41 = vadd.f32 %v2252_v10, %v1200_v39  ;;  %v1689_v42 = vpop.f32.mrb[43].mxu0 }
 0x3a2   : > { %1242 = vst.msk [vmem:[%s2261_s22 + $0x28] sm:$0xff] %vm405_vm0, %v1772_v40 }
 0x3a3   : > { %1777 = vtanh.f32 %v1201_v41 }
 0x3a4   : > { %v1205_v43 = vpop.f32.mrb[44].mxu0 }
 0x3a5   : > { %v1774_v44 = vpop.eup %1773  ;;  %v1206_v45 = vadd.f32 %v2252_v10, %v1205_v43  ;;  %v1692_v46 = vpop.f32.mrb[45].mxu0 }
 0x3a6   : > { %1243 = vst.msk [vmem:[%s2261_s22 + $0x30] sm:$0xff] %vm405_vm0, %v1774_v44 }
 0x3a7   : > { %1779 = vtanh.f32 %v1206_v45 }
 0x3a8   : > { %v1210_v47 = vpop.f32.mrb[52].mxu1 }
 0x3a9   : > { %v1776_v48 = vpop.eup %1775  ;;  %v1211_v49 = vadd.f32 %v2252_v10, %v1210_v47  ;;  %v1695_v50 = vpop.f32.mrb[53].mxu1 }
 0x3aa   : > { %1244 = vst.msk [vmem:[%s2261_s22 + $0x38] sm:$0xff] %vm405_vm0, %v1776_v48 }
 0x3ab   : > { %1781 = vtanh.f32 %v1211_v49 }
 0x3ac   : > { %v1215_v51 = vpop.f32.mrb[54].mxu1 }
 0x3ad   : > { %v1778_v52 = vpop.eup %1777  ;;  %v1216_v53 = vadd.f32 %v2252_v10, %v1215_v51  ;;  %v1698_v2 = vpop.f32.mrb[55].mxu1 }
 0x3ae   : > { %1245 = vst.msk [vmem:[%s2261_s22 + $0x40] sm:$0xff] %vm405_vm0, %v1778_v52 }
 0x3af   : > { %1783 = vtanh.f32 %v1216_v53 }
 0x3b0   : > { %v1220_v54 = vpop.f32.mrb[56].mxu1 }
 0x3b1   : > { %v1780_v55 = vpop.eup %1779  ;;  %v1221_v56 = vadd.f32 %v2252_v10, %v1220_v54  ;;  %v1701_v57 = vpop.f32.mrb[57].mxu1 }
 0x3b2   : > { %1246 = vst.msk [vmem:[%s2261_s22 + $0x48] sm:$0xff] %vm405_vm0, %v1780_v55 }
 0x3b3   : > { %1785 = vtanh.f32 %v1221_v56 }
 0x3b5   : > { %v1782_v8 = vpop.eup %1781 }
 0x3b6   : > { %1247 = vst.msk [vmem:[%s2261_s22 + $0x50] sm:$0xff] %vm405_vm0, %v1782_v8 }
 0x3b9   : > { %v1784_v58 = vpop.eup %1783 }
 0x3ba   : > { %1248 = vst.msk [vmem:[%s2261_s22 + $0x58] sm:$0xff] %vm405_vm0, %v1784_v58 }
 0x3bd   : > { %v1786_v59 = vpop.eup %1785 }
 0x3be   : > { %1249 = vst.msk [vmem:[%s2261_s22 + $0x60] sm:$0xff] %vm405_vm0, %v1786_v59 }
 0x3bf PF: > { %s21_s13 = sadd.s32 1, %s1793_s13  }
 0x3c0   : > { %p18_p4 = scmp.ge.s32.totalorder %s21_s13, 5  }
 0x3c2   :  { %20 = sbr.rel (!%p18_p4) target bundleno = 1 (0x1), region = 98 }

</bundles_post_ra>
